<compile_context>
chip_gen: v7x
topology: tpu7x:2x2x1
jax: 0.10.0
libtpu: 0.0.40
codegen_flags: <defaults>
</compile_context>

<pallas_src>
import jax
import jax.numpy as jnp
from jax.experimental import pallas as pl
from jax.experimental.pallas import tpu as pltpu


def _round_up(x, m):
    return ((x + m - 1) // m) * m


def _fused_heads_kernel(x_ref, wd_ref, bd_ref, o_ref):
    # x_ref : (20, TILE) VMEM — batch rides the 128-wide lane axis.
    # wd_ref: (8, 20)   VMEM — rows 0/1 = primary/secondary delta weights
    #                          (w[:,1] - w[:,0]); rows 2..7 are zero padding so
    #                          the MXU operand is sublane-aligned.
    # bd_ref: (2, 1)    VMEM — per-head delta biases (b[1] - b[0]).
    # o_ref : (4, TILE) VMEM — rows [p0_pri, p1_pri, p0_sec, p1_sec].
    x = x_ref[...]

    # Both heads' logit deltas in ONE MXU contraction: (8,20) @ (20,TILE).
    delta = jnp.dot(wd_ref[...], x, preferred_element_type=jnp.float32)
    delta = delta[0:2, :] + bd_ref[...]                    # (2, TILE)

    # 2-class softmax == sigmoid of the logit delta: single EUP exp per head,
    # approximate EUP reciprocal, and p0 = 1 - p1 (exactly normalized).
    p1 = pl.reciprocal(1.0 + jnp.exp(-delta), approx=True)  # (2, TILE)
    p0 = 1.0 - p1

    # Row stores directly into the merged output slab (no concatenate).
    o_ref[0:1, :] = p0[0:1, :].astype(o_ref.dtype)
    o_ref[1:2, :] = p1[0:1, :].astype(o_ref.dtype)
    o_ref[2:3, :] = p0[1:2, :].astype(o_ref.dtype)
    o_ref[3:4, :] = p1[1:2, :].astype(o_ref.dtype)


def net_heads_forward(x_feat_t, w1, b1, w2, b2, *, tile=32768):
    """Fused primary/secondary softmax heads of `Net`.

    Args:
      x_feat_t: (20, N) float32 representation features, feature-major (batch
        on the trailing / lane axis). No transposes are performed here.
      w1, b1: primary head Linear(20, 2) params, shapes (20, 2) / (2,).
      w2, b2: secondary head params, same shapes.
      tile: batch tile size (multiple of 128).

    Returns:
      (4, N) float32 slab of class probabilities:
        row 0: P(class0 | primary),   row 1: P(class1 | primary),
        row 2: P(class0 | secondary), row 3: P(class1 | secondary).
    """
    in_dim, n = x_feat_t.shape
    if tile % 128 != 0:
        raise ValueError("tile must be a multiple of 128")

    # Packed per-head delta weights / bias (softmax over 2 classes depends only
    # on l1 - l0).  Computed once here; rows 2..7 of Wd are zeros so the MXU
    # operand is a full 8-sublane tile.
    wd = (jnp.zeros((8, in_dim), jnp.float32)
          .at[0].set((w1[:, 1] - w1[:, 0]).astype(jnp.float32))
          .at[1].set((w2[:, 1] - w2[:, 0]).astype(jnp.float32)))
    bd = jnp.stack([b1[1] - b1[0], b2[1] - b2[0]]).astype(jnp.float32).reshape(2, 1)

    # Tile selection: large enough to amortize the ~0.35us/step overhead, but
    # split so the grid has >= 2 steps when possible (lets v7x shard the
    # "parallel" batch axis over both TensorCores); stays multiple of 128 and
    # far under the scoped-VMEM defaults of v5e/v6e/v7x.
    tile = min(tile, _round_up(pl.cdiv(n, 2), 128))
    grid = (pl.cdiv(n, tile),)

    return pl.pallas_call(
        _fused_heads_kernel,
        out_shape=jax.ShapeDtypeStruct((4, n), x_feat_t.dtype),
        grid=grid,
        in_specs=[
            pl.BlockSpec((in_dim, tile), lambda i: (0, i)),   # x: batch-tiled
            pl.BlockSpec((8, in_dim), lambda i: (0, 0)),      # Wd: resident
            pl.BlockSpec((2, 1), lambda i: (0, 0)),           # bd: resident
        ],
        out_specs=pl.BlockSpec((4, tile), lambda i: (0, i)),
        compiler_params=pltpu.CompilerParams(
            dimension_semantics=("parallel",),   # megacore sharding on v7x
        ),
    )(x_feat_t, wd, bd)


def unpack_heads(probs_slab):
    """Convert the (4, N) slab to torch-layout (N, 2) per-head outputs.

    Only for consumers that need the original Net.forward layout; the
    transposes cost an extra HBM pass, so prefer consuming the slab directly.
    """
    return probs_slab[0:2, :].T, probs_slab[2:4, :].T


if __name__ == "__main__":
    key = jax.random.PRNGKey(0)
    kx, kw1, kb1, kw2, kb2 = jax.random.split(key, 5)

    IN, OUT = 20, 2
    bound = 1.0 / (IN ** 0.5)  # mimic torch nn.Linear default uniform init
    w1 = jax.random.uniform(kw1, (IN, OUT), minval=-bound, maxval=bound, dtype=jnp.float32)
    b1 = jax.random.uniform(kb1, (OUT,), minval=-bound, maxval=bound, dtype=jnp.float32)
    w2 = jax.random.uniform(kw2, (IN, OUT), minval=-bound, maxval=bound, dtype=jnp.float32)
    b2 = jax.random.uniform(kb2, (OUT,), minval=-bound, maxval=bound, dtype=jnp.float32)

    fwd = jax.jit(net_heads_forward, static_argnames=("tile",))

    def ref_forward(x_nd):  # x_nd: (N, 20) — reference in the torch layout
        return (jax.nn.softmax(x_nd @ w1 + b1, axis=1),
                jax.nn.softmax(x_nd @ w2 + b2, axis=1))

    # n cases: tiny single partial block; even 2-step grid; 2-step with ragged tail.
    for n in (8, 2048, 1000):
        # Producer emits feature-major (20, N) activations (ReLU'd, like fc3).
        xT = jax.nn.relu(
            jax.random.normal(jax.random.fold_in(kx, n), (IN, n), dtype=jnp.float32))

        probs = fwd(xT, w1, b1, w2, b2)
        jax.block_until_ready(probs)
        assert probs.shape == (2 * OUT, n)

        p_pri, p_sec = unpack_heads(probs)      # test-only layout conversion
        r_pri, r_sec = ref_forward(xT.T)        # test-only reference

        # Tolerance sized for pl.reciprocal(approx=True) (hardware approximate
        # reciprocal on the EUP); the exact-rcp path matches to ~1e-6.
        assert jnp.allclose(p_pri, r_pri, atol=5e-3, rtol=0.0)
        assert jnp.allclose(p_sec, r_sec, atol=5e-3, rtol=0.0)
        # p0 = 1 - p1, so each head's probabilities sum to 1 (to f32 rounding).
        assert jnp.allclose(p_pri.sum(axis=1), 1.0, atol=1e-6)
        assert jnp.allclose(p_sec.sum(axis=1), 1.0, atol=1e-6)

    print("KERNEL_OK")
</pallas_src>

<mosaic_0001>
module attributes {stable_mosaic.version = 11 : i64} {
  func.func @_fused_heads_kernel(%arg0: i32, %arg1: memref<20x128xf32, #tpu.memory_space<vmem>>, %arg2: memref<8x20xf32, #tpu.memory_space<vmem>>, %arg3: memref<2x1xf32, #tpu.memory_space<vmem>>, %arg4: memref<4x128xf32, #tpu.memory_space<vmem>>) attributes {dimension_semantics = [#tpu.dimension_semantics<parallel>], iteration_bounds = array<i64: 1>, scalar_prefetch = 0 : i64, scratch_operands = 0 : i64, tpu.core_type = #tpu.core_type<tc>, window_params = [{transform_indices = @transform_0, window_bounds = array<i64: 20, 128>}, {pipeline_mode = #tpu.pipeline_mode<synchronous>, transform_indices = @transform_1, window_bounds = array<i64: 8, 20>}, {pipeline_mode = #tpu.pipeline_mode<synchronous>, transform_indices = @transform_2, window_bounds = array<i64: 2, 1>}, {transform_indices = @transform_3, window_bounds = array<i64: 4, 128>}]} {
    %c0 = arith.constant 0 : index
    %c0_0 = arith.constant 0 : index
    %0 = vector.load %arg1[%c0, %c0_0] : memref<20x128xf32, #tpu.memory_space<vmem>>, vector<20x128xf32>
    %c0_1 = arith.constant 0 : index
    %c0_2 = arith.constant 0 : index
    %1 = vector.load %arg2[%c0_1, %c0_2] : memref<8x20xf32, #tpu.memory_space<vmem>>, vector<8x20xf32>
    %cst = arith.constant dense<0.000000e+00> : vector<8x128xf32>
    %2 = tpu.matmul %1, %0, %cst {dimension_numbers = #tpu.dot_dimension_numbers<[1], [0], [0], [1], [0, 0, 1, 1], [], []>} : vector<8x20xf32>, vector<20x128xf32>, vector<8x128xf32> -> vector<8x128xf32>
    %3 = vector.extract_strided_slice %2 {offsets = [0, 0], sizes = [2, 128], strides = [1, 1]} : vector<8x128xf32> to vector<2x128xf32>
    %c0_3 = arith.constant 0 : index
    %c0_4 = arith.constant 0 : index
    %4 = vector.load %arg3[%c0_3, %c0_4] : memref<2x1xf32, #tpu.memory_space<vmem>>, vector<2x1xf32>
    %5 = vector.broadcast %4 : vector<2x1xf32> to vector<2x128xf32>
    %6 = arith.addf %3, %5 : vector<2x128xf32>
    %cst_5 = arith.constant 0.000000e+00 : f32
    %7 = vector.broadcast %cst_5 : f32 to vector<2x128xf32>
    %8 = arith.subf %7, %6 : vector<2x128xf32>
    %9 = math.exp %8 : vector<2x128xf32>
    %cst_6 = arith.constant 1.000000e+00 : f32
    %10 = vector.broadcast %cst_6 : f32 to vector<2x128xf32>
    %11 = arith.addf %10, %9 : vector<2x128xf32>
    %12 = tpu.reciprocal %11 {approx = true} : vector<2x128xf32> -> vector<2x128xf32>
    %cst_7 = arith.constant 1.000000e+00 : f32
    %13 = vector.broadcast %cst_7 : f32 to vector<2x128xf32>
    %14 = arith.subf %13, %12 : vector<2x128xf32>
    %15 = vector.extract_strided_slice %14 {offsets = [0, 0], sizes = [1, 128], strides = [1, 1]} : vector<2x128xf32> to vector<1x128xf32>
    %c0_8 = arith.constant 0 : index
    %c0_9 = arith.constant 0 : index
    %16 = vector.load %arg4[%c0_8, %c0_9] : memref<4x128xf32, #tpu.memory_space<vmem>>, vector<1x128xf32>
    tpu.vector_store %arg4[%c0_8, %c0_9], %15 {strides = array<i32>} : memref<4x128xf32, #tpu.memory_space<vmem>>, vector<1x128xf32>,
    %17 = vector.extract_strided_slice %12 {offsets = [0, 0], sizes = [1, 128], strides = [1, 1]} : vector<2x128xf32> to vector<1x128xf32>
    %c1 = arith.constant 1 : index
    %c0_10 = arith.constant 0 : index
    %18 = vector.load %arg4[%c1, %c0_10] : memref<4x128xf32, #tpu.memory_space<vmem>>, vector<1x128xf32>
    tpu.vector_store %arg4[%c1, %c0_10], %17 {strides = array<i32>} : memref<4x128xf32, #tpu.memory_space<vmem>>, vector<1x128xf32>,
    %19 = vector.extract_strided_slice %14 {offsets = [1, 0], sizes = [1, 128], strides = [1, 1]} : vector<2x128xf32> to vector<1x128xf32>
    %c2 = arith.constant 2 : index
    %c0_11 = arith.constant 0 : index
    %20 = vector.load %arg4[%c2, %c0_11] : memref<4x128xf32, #tpu.memory_space<vmem>>, vector<1x128xf32>
    tpu.vector_store %arg4[%c2, %c0_11], %19 {strides = array<i32>} : memref<4x128xf32, #tpu.memory_space<vmem>>, vector<1x128xf32>,
    %21 = vector.extract_strided_slice %12 {offsets = [1, 0], sizes = [1, 128], strides = [1, 1]} : vector<2x128xf32> to vector<1x128xf32>
    %c3 = arith.constant 3 : index
    %c0_12 = arith.constant 0 : index
    %22 = vector.load %arg4[%c3, %c0_12] : memref<4x128xf32, #tpu.memory_space<vmem>>, vector<1x128xf32>
    tpu.vector_store %arg4[%c3, %c0_12], %21 {strides = array<i32>} : memref<4x128xf32, #tpu.memory_space<vmem>>, vector<1x128xf32>,
    return
  }
  func.func @transform_0(%arg0: i32) -> (i32, i32) {
    %c0_i32 = arith.constant 0 : i32
    %c0_i32_0 = arith.constant 0 : i32
    return %c0_i32, %arg0 : i32, i32
  }
  func.func @transform_1(%arg0: i32) -> (i32, i32) {
    %c0_i32 = arith.constant 0 : i32
    %c0_i32_0 = arith.constant 0 : i32
    %c0_i32_1 = arith.constant 0 : i32
    return %c0_i32, %c0_i32_0 : i32, i32
  }
  func.func @transform_2(%arg0: i32) -> (i32, i32) {
    %c0_i32 = arith.constant 0 : i32
    %c0_i32_0 = arith.constant 0 : i32
    %c0_i32_1 = arith.constant 0 : i32
    return %c0_i32, %c0_i32_0 : i32, i32
  }
  func.func @transform_3(%arg0: i32) -> (i32, i32) {
    %c0_i32 = arith.constant 0 : i32
    %c0_i32_0 = arith.constant 0 : i32
    return %c0_i32, %arg0 : i32, i32
  }
}

</mosaic_0001>

<bundles_post_ra>
// kernel: net_heads_forward.1
= control target key start
LH: loop header
LB: loop body
LE: loop exit
PB: predicated region body
PF: predicated region fallthrough
CT: control target
= control target key end

     0   :  { %v180_v2 = vmov 0.0|0.0   ;;  %vm181_vm0 = vmmov 0   ;;  %v182_v5 = vmov 0.0   ;;  %s232_s0 = inlined_call_operand.vmem [shape: f32[20,8], index: 0, kind: input, shape index: {}]   ;;  %s233_s1 = inlined_call_operand.vmem [shape: f32[8,20], index: 1, kind: input, shape index: {}]   ;;  %s234_s2 = inlined_call_operand.vmem [shape: f32[2,1], index: 2, kind: input, shape index: {}]   ;;  %s235_s3 = inlined_call_operand.hbm [shape: f32[4,8], index: 3, kind: output, shape index: {}]  }
   0x1   :  { %v15_v0 = vld [vmem:[%s232_s0] sm:$0xff]  ;;  %v16_v1 = vld [vmem:[%s232_s0 + $0x8] sm:$0xff]  ;;  %143 = vmatprep.subr.bf16.mxu0 %v180_v2  ;;  %140 = vmatprep.mubr.msk.f32.mxu0 %vm181_vm0, %v182_v5 }
   0x2   :  { %v144_v3 = vpack.c.bf16 %v16_v1, %v15_v0  ;;  %v97_v4 = vld [vmem:[%s234_s2] sm:$0x3] }
   0x3   :  { %8 = vsyncpa [#allocation3], 0  ;;  %v183_v6 = vmov 0   ;;  %v17_v7 = vld [vmem:[%s232_s0 + $0x10] sm:$0xf]  ;;  %vm23_vm1 = vcmask 1043456  }
   0x4   :  { %145 = vmatpush3.bf16.msra.mxu0 %v144_v3  ;;  %151 = vset.pattern.permute.xlu0 %v183_v6  ;;  %v18_v8 = vld [vmem:[%s233_s1] sm:$0xff]  ;;  %vm19_vm2 = vcmask 162816   ;;  %s184_s0 = smov [#allocation2]  }
   0x5   :  { %138 = vmatprep.subr.mxu0 %v182_v5  ;;  %100 = vperm.xlu0 %151, %v97_v4   ;;  %s120_s2 = sshll.u32 %s184_s0, 4  ;;  %s121_s2 = int_to_ptr.vmem [resolvable:$true] %s120_s2 }
   0x6   :  { %s156_s1 = scalar_lea.vmem %s121_s2, 64  ;;  %p161_p1 = scmp.lt.s32.totalorder %s121_s2, %s121_s2 }
   0x7   :  { %p157_p0 = scmp.ne.s32.totalorder %s121_s2, %s156_s1  ;;  %p162_p2 = scmp.lt.s32.totalorder %s156_s1, %s156_s1 }
   0x8   :  { %139 = vmatpush3.msk.msra.mxu0 %vm23_vm1, %v17_v7 }
   0x9   :  { %141 = vmatmul.mubr.msk.f32.vlgmr.msra.gmra.mrb[0].mxu0 %vm19_vm2, %v18_v8  ;;  %p163_p3 = por %p162_p2, %p161_p1 }
   0xb   :  { %p164_p4 = pnand %p163_p3, %p157_p0 }
  0x84   :  { %v101_v9 = vpop.permute.xlu0 %100 }
  0xdc   :  { %v93_v10 = vpop.f32.mrb[0].mxu0 }
  0xdd   :  { %v103_v11 = vadd.f32 %v101_v9, %v93_v10  ;;  %v142_v12 = vpop.f32.mrb[1].mxu0 }
  0xdf   :  { %v104_v13 = vsub.f32 0.0, %v103_v11 }
  0xe1   :  { %v105_v14 = vmul.f32 1.442695, %v104_v13 }
  0xe3   :  { %152 = vpow2.f32 %v105_v14 }
  0xed   :  { %v153_v15 = vpop.eup %152 }
  0xee   :  { %v107_v16 = vadd.f32 1.0, %v153_v15 }
  0xf0   :  { %154 = vrcp.f32 %v107_v16 }
  0xfa   :  { %v155_v17 = vpop.eup %154 }
  0xfb   :  { %111 = vst [vmem:[#allocation2 + $0x1] sm:$0x1] %v155_v17  ;;  %113 = vst [vmem:[#allocation2 + $0x2] sm:$0x2] %v155_v17  ;;  %v109_v18 = vsub.f32 1.0, %v155_v17 }
  0xfd   :  { %110 = vst [vmem:[#allocation2] sm:$0x1] %v109_v18  ;;  %112 = vst [vmem:[#allocation2 + $0x1] sm:$0x2] %v109_v18 }
  0xfe   :  { %167 = shalt.err (!%p164_p4)
}
  0xff   :  { %s168_s24 = scalar_lea.hbm %s235_s3, 64 }
 0x100   :  { %p169_p5 = scmp.ne.s32.totalorder %s235_s3, %s168_s24  ;;  %p172_p6 = scmp.lt.u32.totalorder %s168_s24, %s235_s3 }
 0x102   :  { %p174_p7 = pnand %p172_p6, %p169_p5 }
 0x104   :  { %177 = shalt.err (!%p174_p7)
}
 0x105   :  { %123 = dma.vmem_to_hbm [thread:$0]  %s121_s2, 64, %s235_s3, [#allocation3]  }
 0x106   :  { %178 = dma.done.wait [#allocation3], 64  }
 0x107   :  { %179 = vsyncadd [#allocation3], 4294967232 }
 0x108   :  { %127 = vsyncpa [#allocation3], 1 }

</bundles_post_ra>
